<compile_context>
chip_gen: v6e
topology: v6e:2x2x1
jax: 0.10.0
libtpu: 0.0.40
codegen_flags: <defaults>
</compile_context>

<pallas_src>
import functools

import jax
import jax.numpy as jnp
from jax.experimental import pallas as pl
from jax.experimental.pallas import tpu as pltpu

EPS = 1e-5          # nn.InstanceNorm2d default eps
NEG_SLOPE = 0.2     # nn.LeakyReLU(0.2)
L_TILE_CAP = 2048   # max spatial (lane-axis) columns processed per grid step


def _vmem_limit(est_bytes):
    """Explicit scoped-VMEM limit with headroom, clamped to a safe range."""
    return int(min(max(2 * est_bytes + (4 << 20), 32 << 20), 64 << 20))


def _instance_norm_lanes(y):
    """InstanceNorm (affine=False) over the last (spatial/lane) axis; one pass, f32."""
    n = y.shape[-1]
    mean = jnp.sum(y, axis=-1, keepdims=True) * (1.0 / n)
    msq = jnp.sum(y * y, axis=-1, keepdims=True) * (1.0 / n)
    var = jnp.maximum(msq - mean * mean, 0.0)      # clamp: guard cancellation
    return (y - mean) * jax.lax.rsqrt(var + EPS)


# ---------------------------------------------------------------------------
# Pallas kernel 1: conv (im2col matmul, bf16->f32) + InstanceNorm + LeakyReLU
#                  with L-tiled statistics (output resident across L tiles).
# ---------------------------------------------------------------------------
def _conv_in_kernel(p_ref, w_ref, o_ref, sum_ref, ssq_ref, *, apply_lrelu, n_l, t_l):
    # p_ref: (1, K, t_l) bf16 ; w_ref: (Cout, K) bf16 ; o_ref: (1, Cout, L) bf16
    y = jnp.dot(w_ref[...], p_ref[0], preferred_element_type=jnp.float32)  # (Cout, t_l) f32

    if n_l == 1:
        # Whole sample fits in one tile: single-pass finish, all math in f32.
        z = _instance_norm_lanes(y)
        if apply_lrelu:
            z = jnp.where(z > 0, z, NEG_SLOPE * z)
        o_ref[0] = z.astype(o_ref.dtype)
    else:
        l = pl.program_id(1)

        @pl.when(l == 0)
        def _():
            sum_ref[...] = jnp.zeros_like(sum_ref)
            ssq_ref[...] = jnp.zeros_like(ssq_ref)

        sum_ref[...] += jnp.sum(y, axis=1, keepdims=True)
        ssq_ref[...] += jnp.sum(y * y, axis=1, keepdims=True)
        off = pl.multiple_of(l * t_l, 128)            # t_l is a multiple of 128 here
        o_ref[0, :, pl.ds(off, t_l)] = y.astype(o_ref.dtype)   # raw conv into resident out

        @pl.when(l == n_l - 1)
        def _():
            l_total = o_ref.shape[2]
            mean = sum_ref[...] * (1.0 / l_total)
            var = jnp.maximum(ssq_ref[...] * (1.0 / l_total) - mean * mean, 0.0)
            inv = jax.lax.rsqrt(var + EPS)
            z = (o_ref[0].astype(jnp.float32) - mean) * inv
            if apply_lrelu:
                z = jnp.where(z > 0, z, NEG_SLOPE * z)
            o_ref[0] = z.astype(o_ref.dtype)


# ---------------------------------------------------------------------------
# Pallas kernel 2: fully fused residual block (no shift matrices).
#   reflect-pad + conv1(3x3) + IN + LReLU + reflect-pad + conv2(3x3) + IN + x
#   3x3 stencil = on-chip pad (concat) + 9 tap slices -> one (C, 9C)@(9C, L) matmul.
# ---------------------------------------------------------------------------
def _conv3x3_pad_taps(v, w):
    """v: (C, H, W) f32 (unpadded); w: (Cout, 9*C) bf16 in (tap-major, cin-minor) order."""
    C, H, W = v.shape
    # ReflectionPad2d(1): index -1 -> 1, H -> H-2 (same for W).  Corners compose.
    vp = jnp.concatenate([v[:, 1:2, :], v, v[:, H - 2:H - 1, :]], axis=1)     # (C, H+2, W)
    vp = jnp.concatenate([vp[:, :, 1:2], vp, vp[:, :, W - 2:W - 1]], axis=2)  # (C, H+2, W+2)
    taps = [vp[:, ky:ky + H, kx:kx + W] for ky in range(3) for kx in range(3)]
    patches = jnp.concatenate(taps, axis=0).reshape(9 * C, H * W).astype(jnp.bfloat16)
    return jnp.dot(w, patches, preferred_element_type=jnp.float32)            # (Cout, L) f32


def _resblock_kernel(x_ref, w1_ref, w2_ref, o_ref):
    # x_ref: (1, C, H, W) bf16/f32 ; w{1,2}_ref: (C, 9C) bf16 ; o_ref: (1, C, L) bf16
    _, C, H, W = x_ref.shape
    L = H * W
    x = x_ref[0].astype(jnp.float32)                                # (C, H, W)

    h = _instance_norm_lanes(_conv3x3_pad_taps(x, w1_ref[...]))     # (C, L) f32
    h = jnp.where(h > 0, h, NEG_SLOPE * h)
    y = _instance_norm_lanes(_conv3x3_pad_taps(h.reshape(C, H, W), w2_ref[...]))
    o_ref[0] = (y + x.reshape(C, L)).astype(o_ref.dtype)


# ---------------------------------------------------------------------------
# JAX glue
# ---------------------------------------------------------------------------
def _im2col(xp, k, stride):
    """xp: already-padded (N, C, Hp, Wp). Returns (N, K=C*k*k, L=Ho*Wo) patches."""
    N, C, Hp, Wp = xp.shape
    Ho = (Hp - k) // stride + 1
    Wo = (Wp - k) // stride + 1
    cols = []
    for ky in range(k):
        for kx in range(k):
            cols.append(
                xp[:, :,
                   ky:ky + stride * (Ho - 1) + 1:stride,
                   kx:kx + stride * (Wo - 1) + 1:stride])
    p = jnp.stack(cols, axis=2)              # (N, C, k*k, Ho, Wo); order (c, ky, kx)
    p = p.reshape(N, C * k * k, Ho * Wo)     # (N, K, L) matches w.reshape(Cout, K)
    return p, Ho, Wo


def _choose_l_tile(L):
    if L <= L_TILE_CAP:
        return L
    for t in range(L_TILE_CAP, 127, -128):
        if L % t == 0:
            return t
    return L  # TODO(synk): pad L to a multiple of 128 for odd large resolutions


def fused_conv_in(x, layer, *, apply_lrelu):
    """ReflectionPad2d(pad) -> Conv2d(bias=False) -> InstanceNorm2d [-> LeakyReLU(0.2)].
    x: (N, Cin, H, W); layer: prepped {'w_mat': (Cout, K) bf16, 'k','stride','pad'}."""
    w_mat = layer["w_mat"]
    k, stride, pad = layer["k"], layer["stride"], layer["pad"]
    N = x.shape[0]
    Cout, K = w_mat.shape

    # bf16 before the k^2 im2col expansion -> halves HBM traffic of patches.
    xp = jnp.pad(x.astype(jnp.bfloat16),
                 ((0, 0), (0, 0), (pad, pad), (pad, pad)), mode="reflect")
    patches, Ho, Wo = _im2col(xp, k, stride)     # (N, K, L) bf16
    L = Ho * Wo
    t_l = _choose_l_tile(L)
    n_l = L // t_l

    kernel = functools.partial(_conv_in_kernel,
                               apply_lrelu=apply_lrelu, n_l=n_l, t_l=t_l)

    flops = int(2 * N * Cout * K * L + 10 * N * Cout * L)
    bytes_accessed = int(N * K * L * 2 + Cout * K * 2 + N * Cout * L * 2)
    est_vmem = 4 * K * t_l + 4 * Cout * K + 2 * Cout * L + 8 * Cout * t_l

    out = pl.pallas_call(
        kernel,
        grid=(N, n_l),
        in_specs=[
            pl.BlockSpec((1, K, t_l), lambda n, l: (n, 0, l)),   # per-sample L tile
            pl.BlockSpec((Cout, K), lambda n, l: (0, 0)),        # shared weights
        ],
        out_specs=pl.BlockSpec((1, Cout, L), lambda n, l: (n, 0, 0)),  # resident over l
        out_shape=jax.ShapeDtypeStruct((N, Cout, L), jnp.bfloat16),
        scratch_shapes=[pltpu.VMEM((Cout, 1), jnp.float32),   # running sum
                        pltpu.VMEM((Cout, 1), jnp.float32)],  # running sum of squares
        compiler_params=pltpu.CompilerParams(
            dimension_semantics=("parallel", "arbitrary"),
            vmem_limit_bytes=_vmem_limit(est_vmem)),
        cost_estimate=pl.CostEstimate(flops=flops, transcendentals=N * Cout,
                                      bytes_accessed=bytes_accessed),
    )(patches, w_mat)

    # (N, Cout, L) is already channel-major -> reshape straight to NCHW, no transpose.
    return out.reshape(N, Cout, Ho, Wo)


def residual_block(x, w1_mat, w2_mat):
    """Fused ResidualBlock (pad+conv1+IN+LReLU+pad+conv2+IN, +x) in ONE pallas_call."""
    N, C, H, W = x.shape
    L = H * W

    flops = int(4 * N * C * (9 * C) * L + 20 * N * C * L)
    bytes_accessed = int(N * C * L * x.dtype.itemsize + 2 * 9 * C * C * 2 + N * C * L * 2)
    est_vmem = (4 * C * L * x.dtype.itemsize + 4 * 9 * C * C * 2
                + 9 * C * L * 4 + 8 * C * L * 4)

    out = pl.pallas_call(
        _resblock_kernel,
        grid=(N,),
        in_specs=[
            pl.BlockSpec((1, C, H, W), lambda n: (n, 0, 0, 0)),
            pl.BlockSpec((C, 9 * C), lambda n: (0, 0)),
            pl.BlockSpec((C, 9 * C), lambda n: (0, 0)),
        ],
        out_specs=pl.BlockSpec((1, C, L), lambda n: (n, 0, 0)),
        out_shape=jax.ShapeDtypeStruct((N, C, L), jnp.bfloat16),
        compiler_params=pltpu.CompilerParams(
            dimension_semantics=("parallel",),
            vmem_limit_bytes=_vmem_limit(est_vmem)),
        cost_estimate=pl.CostEstimate(flops=flops, transcendentals=2 * N * C,
                                      bytes_accessed=bytes_accessed),
    )(x, w1_mat, w2_mat)
    return out.reshape(N, C, H, W)


# ---------------------------------------------------------------------------
# E2 parameters (deterministic init, hoisted weight prep) and forward pass
# ---------------------------------------------------------------------------
def init_e2_params(key, n_feats, sep, n_blocks, n_res_blocks):
    """Raw conv weights in PyTorch (Cout, Cin, k, k) layout, f32."""
    def conv_w(k_, cout, cin, ksz):
        fan_in = cin * ksz * ksz
        return jax.random.normal(k_, (cout, cin, ksz, ksz), jnp.float32) * (2.0 / fan_in) ** 0.5

    n_keys = 1 + n_blocks + 1 + 2 * n_res_blocks
    keys = iter(jax.random.split(key, n_keys))

    raw = {"conv0": conv_w(next(keys), n_feats, 3, 7)}
    n_f = n_feats
    downs = []
    for _ in range(n_blocks):
        downs.append(conv_w(next(keys), 2 * n_f, n_f, 3))
        n_f *= 2
    raw["downs"] = downs
    raw["conv_last"] = conv_w(next(keys), sep, n_f, 3)
    raw["res"] = [(conv_w(next(keys), sep, sep, 3), conv_w(next(keys), sep, sep, 3))
                  for _ in range(n_res_blocks)]
    return raw


def prepare_e2_params(raw):
    """Hoisted weight prep: kernel-ready bf16 matrices built once, not per forward."""
    def conv_layer(w, stride, pad):
        cout, cin, k, _ = w.shape
        # K order = (cin-major, tap-minor), matching wrapper-side im2col.
        return {"w_mat": w.reshape(cout, cin * k * k).astype(jnp.bfloat16),
                "k": k, "stride": stride, "pad": pad}

    def taps_mat(w):
        cout, cin, k, _ = w.shape
        # (Cout, Cin, ky, kx) -> (Cout, ky, kx, Cin) -> (Cout, 9*Cin):
        # tap-major / channel-minor, matching the in-kernel patch concatenation.
        return w.transpose(0, 2, 3, 1).reshape(cout, k * k * cin).astype(jnp.bfloat16)

    return {
        "conv0": conv_layer(raw["conv0"], stride=1, pad=3),
        "downs": [conv_layer(w, stride=2, pad=1) for w in raw["downs"]],
        "conv_last": conv_layer(raw["conv_last"], stride=2, pad=1),
        "res": [(taps_mat(w1), taps_mat(w2)) for (w1, w2) in raw["res"]],
    }


def e2_forward(params, x):
    # stem: ReflectionPad2d(3) + Conv 7x7/1 + IN + LeakyReLU
    out = fused_conv_in(x, params["conv0"], apply_lrelu=True)
    # downsampling blocks: ReflectionPad2d(1) + Conv 3x3/2 + IN + LeakyReLU
    for layer in params["downs"]:
        out = fused_conv_in(out, layer, apply_lrelu=True)
    # final downsample to `sep` channels
    out = fused_conv_in(out, params["conv_last"], apply_lrelu=True)
    # residual blocks: fully fused, one pallas_call per block (no shift matrices)
    for w1_mat, w2_mat in params["res"]:
        out = residual_block(out, w1_mat, w2_mat)
    return out.astype(jnp.float32)


if __name__ == "__main__":
    # Small, consistent configuration (module constructor args scaled down).
    n_feats, sep, n_blocks, n_res_blocks = 8, 32, 2, 2

    key = jax.random.PRNGKey(0)
    k_x, k_p = jax.random.split(key)
    x = jax.random.normal(k_x, (2, 3, 32, 32), jnp.float32)   # NCHW like PyTorch
    raw = init_e2_params(k_p, n_feats, sep, n_blocks, n_res_blocks)
    params = prepare_e2_params(raw)

    y = e2_forward(params, x)
    jax.block_until_ready(y)
    # spatial is downsampled by 2**(n_blocks+1): 32 -> 4, channels -> sep
    assert y.shape == (2, sep, 4, 4)
    print("KERNEL_OK")
</pallas_src>

<mosaic_0001>
module attributes {stable_mosaic.version = 11 : i64} {
  func.func @_conv_in_kernel(%arg0: i32, %arg1: i32, %arg2: memref<1x147x1024xbf16, #tpu.memory_space<vmem>>, %arg3: memref<8x147xbf16, #tpu.memory_space<vmem>>, %arg4: memref<1x8x1024xbf16, #tpu.memory_space<vmem>>, %arg5: memref<8x1xf32, #tpu.memory_space<vmem>>, %arg6: memref<8x1xf32, #tpu.memory_space<vmem>>) attributes {dimension_semantics = [#tpu.dimension_semantics<parallel>, #tpu.dimension_semantics<arbitrary>], iteration_bounds = array<i64: 2, 1>, scalar_prefetch = 0 : i64, scratch_operands = 2 : i64, tpu.core_type = #tpu.core_type<tc>, window_params = [{transform_indices = @transform_0, window_bounds = array<i64: 1, 147, 1024>}, {pipeline_mode = #tpu.pipeline_mode<synchronous>, transform_indices = @transform_1, window_bounds = array<i64: 8, 147>}, {transform_indices = @transform_2, window_bounds = array<i64: 1, 8, 1024>}]} {
    %c0 = arith.constant 0 : index
    %c0_0 = arith.constant 0 : index
    %0 = vector.load %arg3[%c0, %c0_0] : memref<8x147xbf16, #tpu.memory_space<vmem>>, vector<8x147xbf16>
    %c0_1 = arith.constant 0 : index
    %c0_2 = arith.constant 0 : index
    %c0_3 = arith.constant 0 : index
    %1 = vector.load %arg2[%c0_1, %c0_2, %c0_3] : memref<1x147x1024xbf16, #tpu.memory_space<vmem>>, vector<1x147x1024xbf16>
    %2 = vector.shape_cast %1 : vector<1x147x1024xbf16> to vector<147x1024xbf16>
    %cst = arith.constant dense<0.000000e+00> : vector<8x1024xf32>
    %3 = tpu.matmul %0, %2, %cst {dimension_numbers = #tpu.dot_dimension_numbers<[1], [0], [0], [1], [0, 0, 1, 1], [], []>} : vector<8x147xbf16>, vector<147x1024xbf16>, vector<8x1024xf32> -> vector<8x1024xf32>
    %cst_4 = arith.constant dense<0.000000e+00> : vector<8xf32>
    %4 = vector.multi_reduction <add>, %3, %cst_4 [1] : vector<8x1024xf32> to vector<8xf32>
    %5 = vector.shape_cast %4 : vector<8xf32> to vector<8x1xf32>
    %cst_5 = arith.constant 9.765625E-4 : f32
    %6 = vector.broadcast %cst_5 : f32 to vector<8x1xf32>
    %7 = arith.mulf %5, %6 : vector<8x1xf32>
    %8 = arith.mulf %3, %3 : vector<8x1024xf32>
    %cst_6 = arith.constant dense<0.000000e+00> : vector<8xf32>
    %9 = vector.multi_reduction <add>, %8, %cst_6 [1] : vector<8x1024xf32> to vector<8xf32>
    %10 = vector.shape_cast %9 : vector<8xf32> to vector<8x1xf32>
    %cst_7 = arith.constant 9.765625E-4 : f32
    %11 = vector.broadcast %cst_7 : f32 to vector<8x1xf32>
    %12 = arith.mulf %10, %11 : vector<8x1xf32>
    %13 = arith.mulf %7, %7 : vector<8x1xf32>
    %14 = arith.subf %12, %13 : vector<8x1xf32>
    %cst_8 = arith.constant 0.000000e+00 : f32
    %15 = vector.broadcast %cst_8 : f32 to vector<8x1xf32>
    %16 = arith.maximumf %14, %15 : vector<8x1xf32>
    %17 = vector.broadcast %7 : vector<8x1xf32> to vector<8x1024xf32>
    %18 = arith.subf %3, %17 : vector<8x1024xf32>
    %cst_9 = arith.constant 9.99999974E-6 : f32
    %19 = vector.broadcast %cst_9 : f32 to vector<8x1xf32>
    %20 = arith.addf %16, %19 : vector<8x1xf32>
    %21 = math.rsqrt %20 : vector<8x1xf32>
    %22 = vector.broadcast %21 : vector<8x1xf32> to vector<8x1024xf32>
    %23 = arith.mulf %18, %22 : vector<8x1024xf32>
    %cst_10 = arith.constant 0.000000e+00 : f32
    %24 = vector.broadcast %cst_10 : f32 to vector<8x1024xf32>
    %25 = arith.cmpf ogt, %23, %24 : vector<8x1024xf32>
    %cst_11 = arith.constant 2.000000e-01 : f32
    %26 = vector.broadcast %cst_11 : f32 to vector<8x1024xf32>
    %27 = arith.mulf %26, %23 : vector<8x1024xf32>
    %28 = arith.select %25, %23, %27 : vector<8x1024xi1>, vector<8x1024xf32>
    %29 = arith.truncf %28 : vector<8x1024xf32> to vector<8x1024xbf16>
    %c0_12 = arith.constant 0 : index
    %c0_13 = arith.constant 0 : index
    %c0_14 = arith.constant 0 : index
    %30 = vector.load %arg4[%c0_12, %c0_13, %c0_14] : memref<1x8x1024xbf16, #tpu.memory_space<vmem>>, vector<1x8x1024xbf16>
    %31 = vector.shape_cast %30 : vector<1x8x1024xbf16> to vector<8x1024xbf16>
    %32 = vector.shape_cast %29 : vector<8x1024xbf16> to vector<1x8x1024xbf16>
    tpu.vector_store %arg4[%c0_12, %c0_13, %c0_14], %32 {strides = array<i32>} : memref<1x8x1024xbf16, #tpu.memory_space<vmem>>, vector<1x8x1024xbf16>,
    return
  }
  func.func @transform_0(%arg0: i32, %arg1: i32) -> (i32, i32, i32) {
    %c0_i32 = arith.constant 0 : i32
    %c0_i32_0 = arith.constant 0 : i32
    return %arg0, %c0_i32, %arg1 : i32, i32, i32
  }
  func.func @transform_1(%arg0: i32, %arg1: i32) -> (i32, i32) {
    %c0_i32 = arith.constant 0 : i32
    %c0_i32_0 = arith.constant 0 : i32
    %c0_i32_1 = arith.constant 0 : i32
    return %c0_i32, %c0_i32_0 : i32, i32
  }
  func.func @transform_2(%arg0: i32, %arg1: i32) -> (i32, i32, i32) {
    %c0_i32 = arith.constant 0 : i32
    %c0_i32_0 = arith.constant 0 : i32
    %c0_i32_1 = arith.constant 0 : i32
    return %arg0, %c0_i32, %c0_i32_0 : i32, i32, i32
  }
}

</mosaic_0001>

<bundles_post_ra>
// kernel: tpu_custom_call.1
= control target key start
LH: loop header
LB: loop body
LE: loop exit
PB: predicated region body
PF: predicated region fallthrough
CT: control target
= control target key end

     0   :  { %7 = vsyncpa [#allocation5], 0  ;;  %s1534_s0 = inlined_call_operand.vmem [shape: bf16[2,147,1024], index: 0, kind: input, shape index: {}]   ;;  %s1535_s1 = inlined_call_operand.vmem [shape: bf16[8,147], index: 1, kind: input, shape index: {}]   ;;  %s1536_s2 = inlined_call_operand.hbm [shape: bf16[2,8,1024], index: 2, kind: output, shape index: {}]  }
   0x1   :  { %9 = vsyncpa [#allocation5 + $0x1], 0  ;;  %s1298_s9 = smov 0   ;;  %s1300_s10 = smov 0  }
   0x2   :  { %s1302_s11 = smov 0   ;;  %s1304_s12 = smov 0  }
   0x3   :  { %s1306_s13 = smov 0   ;;  %s1308_s14 = smov 0  }
   0x4 LB: > { %s1027_s15 = sadd.s32 4294967295, %s1279_s14   ;;  %s1028_s16 = sadd.s32 4294967294, %s1279_s14   ;;  %s1279_s14 = sphi %s1308_s14, %s15_s14   ;;  %s1275_s13 = sphi %s1306_s13, %s1543_s13   ;;  %s1271_s12 = sphi %s1304_s12, %s1542_s12   ;;  %s1267_s11 = sphi %s1302_s11, %s1541_s11   ;;  %s1263_s10 = sphi %s1300_s10, %s1540_s10   ;;  %s1259_s9 = sphi %s1298_s9, %s1539_s9  }
   0x5   : > { %s27_s17 = sadd.s32 1, %s1275_s13  ;;  %s83_s18 = sadd.s32 1, %s1267_s11 }
   0x6   : > { %p29_p0 = scmp.ge.s32.totalorder %s27_s17, 2  ;;  %p93_p1 = scmp.ne.s32.totalorder %s1267_s11, %s1263_s10 }
   0x7   : > { %p94_p2 = scmp.eq.s32.totalorder %s1027_s15, 1  ;;  %p99_p3 = scmp.ne.s32.totalorder %s1263_s10, %s1259_s9 }
   0x8   : > { %s1545_s17 = smov (%p29_p0, %s27_s17), 0  ;;  %p100_p5 = scmp.eq.s32.totalorder %s1028_s16, 1 }
   0x9   : > { %p1338_p4 = por %p94_p2, %p93_p1  ;;  %s80_s20 = ssub.s32 %s1275_s13, %s1545_s17 }
   0xa   : > { %p1031_p6 = scmp.ge.s32.totalorder %s1279_s14, 1  ;;  %p81_p7 = scmp.eq.s32.totalorder %s80_s20, 0 }
   0xb   : > { %p1345_p8 = por %p100_p5, %p99_p3  ;;  %p134_p9 = scmp.lt.s32.totalorder %s1279_s14, 3 }
   0xc   : > { %s1351_s22 = scalar_select %p81_p7, %s1267_s11, %s83_s18  }
   0xd   : > { %p135_p10 = pnand %p1031_p6, %p134_p9 }
   0xe   : > { %p161_p11 = scmp.lt.s32.totalorder (!%p135_p10), %s1271_s12, 1  ;;  %s157_s30 = sand.u32 (!%p135_p10), 1, %s1263_s10  }
   0xf   : > { %138 = sbr.rel (%p135_p10) target bundleno = 498 (0x1f2), region = 28  ;;  %s1032_s3 = sshll.u32 (!%p135_p10), %s157_s30, 5 }
  0x10   : > { %s1133_s4 = sshll.u32 (!%p135_p10), %s1271_s12, 9  ;;  %s159_s5 = scalar_lea.vmem (!%p135_p10), [#allocation4], %s1032_s3 }
  0x11   : > { %s954_s6 = sshll.u32 (!%p135_p10), %s159_s5, 4  ;;  %s940_s15 = scalar_lea.sflag (!%p135_p10), [#allocation5], %s157_s30  ;;  %s1488_s6 = int_to_ptr.vmem [resolvable:$true] %s954_s6 }
  0x12   : > { %s1203_s16 = scalar_lea.vmem (!%p135_p10), %s1488_s6, 512  ;;  %s1282_s18 = smov (!%p135_p10), [#allocation4]  }
  0x13   : > { %p1204_p12 = scmp.ne.s32.totalorder (!%p135_p10), %s1488_s6, %s1203_s16  ;;  %s1207_s20 = sshll.u32 (!%p135_p10), %s1282_s18, 4  ;;  %s1208_s20 = int_to_ptr.vmem [resolvable:$false] %s1207_s20 }
  0x14   : > { %v1357_v0 = vld [vmem:[%s1535_s1] sm:$0xff]  ;;  %vm634_vm0 = vcmask 154624   ;;  %s162_s25 = scalar_select %p161_p11, %s1271_s12, 1  ;;  %vm638_vm1 = vcmask 1040384   ;;  %vm639_vm2 = vcmask 1041408   ;;  %v1281_v61 = vmov 65535  }
  0x15   : > { %v1361_v1 = vcombine.high %v1357_v0, %v1357_v0  ;;  %v640_v62 = vsel %vm638_vm1, 4294967295, %v1281_v61  ;;  %s1486_s12 = scalar_lea.hbm %s1536_s2, %s1133_s4  ;;  %p1205_p13 = pnand %p1204_p12, %p1338_p4 }
  0x16   : > { %s1134_s26 = smul.u32 608, %s162_s25  ;;  %s1209_s23 = scalar_lea.vmem %s1208_s20, 1024 }
  0x17   : > { %1116 = vmatprep.mubr.msk.bf16.mxu0 %vm634_vm0, %v1361_v1  ;;  %1117 = vmatprep.mubr.msk.bf16.mxu1 %vm634_vm0, %v1361_v1  ;;  %p1206_p0 = pneg %p1205_p13  ;;  %p1210_p1 = scmp.lt.s32.totalorder %s1488_s6, %s1208_s20 }
  0x18   : > { %s1371_s29 = scalar_lea.vmem %s1534_s0, %s1134_s26  ;;  %p1211_p2 = scmp.lt.s32.totalorder %s1209_s23, %s1203_s16 }
  0x19   : > { %v228_v2 = vld [vmem:[%s1371_s29 + $0x1c0] sm:$0xff]  ;;  %v229_v4 = vld [vmem:[%s1371_s29 + $0x1c8] sm:$0xff] }
  0x1a   : > { %v232_v3 = vld [vmem:[%s1371_s29 + $0x1e0] sm:$0xff]  ;;  %v233_v6 = vld [vmem:[%s1371_s29 + $0x1e8] sm:$0xff]  ;;  %p1212_p3 = por %p1211_p2, %p1210_p1 }
  0x1b   : > { %v1093_v5 = vcombine.high %v228_v2, %v232_v3  ;;  %v1092_v7 = vcombine.low %v228_v2, %v232_v3  ;;  %v220_v8 = vld [vmem:[%s1371_s29 + $0x180] sm:$0xff]  ;;  %v1095_v10 = vcombine.high %v229_v4, %v233_v6  ;;  %v1094_v11 = vcombine.low %v229_v4, %v233_v6  ;;  %v221_v13 = vld [vmem:[%s1371_s29 + $0x188] sm:$0xff] }
  0x1c   : > { %v224_v9 = vld [vmem:[%s1371_s29 + $0x1a0] sm:$0xff]  ;;  %v225_v14 = vld [vmem:[%s1371_s29 + $0x1a8] sm:$0xff]  ;;  %p1213_p5 = pnand %p1212_p3, %p1206_p0 }
  0x1d   : > { %v1085_v12 = vcombine.high %v220_v8, %v224_v9  ;;  %v212_v15 = vld [vmem:[%s1371_s29 + $0x140] sm:$0xff]  ;;  %666 = vmatprep.subr.bf16.mxu0 %v1093_v5  ;;  %v1087_v16 = vcombine.high %v221_v13, %v225_v14  ;;  %v213_v18 = vld [vmem:[%s1371_s29 + $0x148] sm:$0xff]  ;;  %707 = vmatprep.subr.bf16.mxu1 %v1095_v10  ;;  %v1084_v20 = vcombine.low %v220_v8, %v224_v9 }
  0x1e   : > { %v216_v17 = vld [vmem:[%s1371_s29 + $0x160] sm:$0xff]  ;;  %v217_v19 = vld [vmem:[%s1371_s29 + $0x168] sm:$0xff]  ;;  %667 = vmatpush1.bf16.msra.mxu0 %v1092_v7  ;;  %708 = vmatpush1.bf16.msra.mxu1 %v1094_v11  ;;  %v1086_v21 = vcombine.low %v221_v13, %v225_v14  ;;  %v1407_v7 = vsel %vm639_vm2, %v640_v62, 0  ;;  %v190_v62 = vld [vmem:[%s1371_s29 + $0x90] sm:$0xff] }
  0x1f   : > { %668 = vmatprep.subr.bf16.mxu0 %v1085_v12  ;;  %v1077_v22 = vcombine.high %v212_v15, %v216_v17  ;;  %709 = vmatprep.subr.bf16.mxu1 %v1087_v16  ;;  %v1079_v23 = vcombine.high %v213_v18, %v217_v19  ;;  %v204_v24 = vld [vmem:[%s1371_s29 + $0x100] sm:$0xff]  ;;  %v205_v26 = vld [vmem:[%s1371_s29 + $0x108] sm:$0xff]  ;;  %v1076_v28 = vcombine.low %v212_v15, %v216_v17 }
  0x20   : > { %v208_v25 = vld [vmem:[%s1371_s29 + $0x120] sm:$0xff]  ;;  %v209_v27 = vld [vmem:[%s1371_s29 + $0x128] sm:$0xff]  ;;  %v1078_v29 = vcombine.low %v213_v18, %v217_v19 }
  0x21   : > { %v1069_v30 = vcombine.high %v204_v24, %v208_v25  ;;  %v1071_v31 = vcombine.high %v205_v26, %v209_v27  ;;  %v196_v32 = vld [vmem:[%s1371_s29 + $0xc0] sm:$0xff]  ;;  %v197_v34 = vld [vmem:[%s1371_s29 + $0xc8] sm:$0xff]  ;;  %v1068_v36 = vcombine.low %v204_v24, %v208_v25  ;;  %v1070_v37 = vcombine.low %v205_v26, %v209_v27  ;;  %v234_v24 = vld [vmem:[%s1371_s29 + $0x1f0] sm:$0xff] }
  0x22   : > { %669 = vmatpush1.bf16.msra.mxu0 %v1084_v20  ;;  %710 = vmatpush1.bf16.msra.mxu1 %v1086_v21  ;;  %v200_v33 = vld [vmem:[%s1371_s29 + $0xe0] sm:$0xff]  ;;  %v201_v35 = vld [vmem:[%s1371_s29 + $0xe8] sm:$0xff]  ;;  %v231_v25 = vld [vmem:[%s1371_s29 + $0x1d8] sm:$0xff] }
  0x23   : > { %670 = vmatprep.subr.bf16.mxu0 %v1077_v22  ;;  %711 = vmatprep.subr.bf16.mxu1 %v1079_v23  ;;  %v1061_v38 = vcombine.high %v196_v32, %v200_v33  ;;  %v1063_v39 = vcombine.high %v197_v34, %v201_v35  ;;  %v188_v40 = vld [vmem:[%s1371_s29 + $0x80] sm:$0xff]  ;;  %v189_v42 = vld [vmem:[%s1371_s29 + $0x88] sm:$0xff]  ;;  %v1060_v44 = vcombine.low %v196_v32, %v200_v33  ;;  %v230_v23 = vld [vmem:[%s1371_s29 + $0x1d0] sm:$0xff] }
  0x24   : > { %v192_v41 = vld [vmem:[%s1371_s29 + $0xa0] sm:$0xff]  ;;  %v193_v43 = vld [vmem:[%s1371_s29 + $0xa8] sm:$0xff]  ;;  %v1062_v45 = vcombine.low %v197_v34, %v201_v35  ;;  %v235_v26 = vld [vmem:[%s1371_s29 + $0x1f8] sm:$0xff]  ;;  %v1425_v33 = vcombine.low %v1357_v0, %v1357_v0 }
  0x25   : > { %v1053_v46 = vcombine.high %v188_v40, %v192_v41  ;;  %v1055_v47 = vcombine.high %v189_v42, %v193_v43  ;;  %v180_v48 = vld [vmem:[%s1371_s29 + $0x40] sm:$0xff]  ;;  %v181_v50 = vld [vmem:[%s1371_s29 + $0x48] sm:$0xff]  ;;  %v1052_v52 = vcombine.low %v188_v40, %v192_v41  ;;  %v1054_v53 = vcombine.low %v189_v42, %v193_v43  ;;  %v226_v32 = vld [vmem:[%s1371_s29 + $0x1b0] sm:$0xff] }
  0x26   : > { %671 = vmatpush1.bf16.msra.mxu0 %v1076_v28  ;;  %712 = vmatpush1.bf16.msra.mxu1 %v1078_v29  ;;  %v184_v49 = vld [vmem:[%s1371_s29 + $0x60] sm:$0xff]  ;;  %v185_v51 = vld [vmem:[%s1371_s29 + $0x68] sm:$0xff]  ;;  %v1097_v29 = vcombine.high %v230_v23, %v234_v24  ;;  %v223_v34 = vld [vmem:[%s1371_s29 + $0x198] sm:$0xff] }
  0x27   : > { %672 = vmatprep.subr.bf16.mxu0 %v1069_v30  ;;  %713 = vmatprep.subr.bf16.mxu1 %v1071_v31  ;;  %v1045_v54 = vcombine.high %v180_v48, %v184_v49  ;;  %v1047_v55 = vcombine.high %v181_v50, %v185_v51  ;;  %v172_v56 = vld [vmem:[%s1371_s29] sm:$0xff]  ;;  %v173_v59 = vld [vmem:[%s1371_s29 + $0x8] sm:$0xff]  ;;  %v1044_v2 = vcombine.low %v180_v48, %v184_v49  ;;  %v222_v31 = vld [vmem:[%s1371_s29 + $0x190] sm:$0xff] }
  0x28   : > { %v176_v57 = vld [vmem:[%s1371_s29 + $0x20] sm:$0xff]  ;;  %v177_v60 = vld [vmem:[%s1371_s29 + $0x28] sm:$0xff]  ;;  %v1046_v3 = vcombine.low %v181_v50, %v185_v51  ;;  %v1099_v30 = vcombine.high %v231_v25, %v235_v26  ;;  %v227_v35 = vld [vmem:[%s1371_s29 + $0x1b8] sm:$0xff]  ;;  %v1088_v43 = vcombine.low %v222_v31, %v226_v32 }
  0x29   : > { %v244_v58 = vld [vmem:[%s1371_s29 + $0x240] sm:$0x33]  ;;  %v245_v63 = vld [vmem:[%s1371_s29 + $0x248] sm:$0x33]  ;;  %v1037_v4 = vcombine.high %v172_v56, %v176_v57  ;;  %v1039_v6 = vcombine.high %v173_v59, %v177_v60  ;;  %v1036_v9 = vcombine.low %v172_v56, %v176_v57  ;;  %v1038_v11 = vcombine.low %v173_v59, %v177_v60  ;;  %v214_v40 = vld [vmem:[%s1371_s29 + $0x150] sm:$0xff] }
  0x2a   : > { %673 = vmatpush1.bf16.msra.mxu0 %v1068_v36  ;;  %714 = vmatpush1.bf16.msra.mxu1 %v1070_v37  ;;  %v1109_v5 = vcombine.high %v244_v58, %v244_v58  ;;  %v1111_v8 = vcombine.high %v245_v63, %v245_v63  ;;  %v1108_v10 = vcombine.low %v244_v58, %v244_v58  ;;  %v236_v15 = vld [vmem:[%s1371_s29 + $0x200] sm:$0xff]  ;;  %v237_v17 = vld [vmem:[%s1371_s29 + $0x208] sm:$0xff]  ;;  %v218_v41 = vld [vmem:[%s1371_s29 + $0x170] sm:$0xff] }
  0x2b   : > { %674 = vmatprep.subr.bf16.mxu0 %v1061_v38  ;;  %715 = vmatprep.subr.bf16.mxu1 %v1063_v39  ;;  %v1110_v13 = vcombine.low %v245_v63, %v245_v63  ;;  %v240_v16 = vld [vmem:[%s1371_s29 + $0x220] sm:$0xff]  ;;  %v241_v18 = vld [vmem:[%s1371_s29 + $0x228] sm:$0xff]  ;;  %v1096_v36 = vcombine.low %v230_v23, %v234_v24  ;;  %v1098_v37 = vcombine.low %v231_v25, %v235_v26  ;;  %v215_v0 = vld [vmem:[%s1371_s29 + $0x158] sm:$0xff] }
  0x2c   : > { %v646_v12 = vand.u32 %v1109_v5, %v1407_v7  ;;  %v652_v14 = vand.u32 %v1111_v8, %v1407_v7  ;;  %v643_v19 = vand.u32 %v1108_v10, %v1407_v7  ;;  %v1101_v21 = vcombine.high %v236_v15, %v240_v16  ;;  %v219_v42 = vld [vmem:[%s1371_s29 + $0x178] sm:$0xff]  ;;  %v210_v48 = vld [vmem:[%s1371_s29 + $0x130] sm:$0xff] }
  0x2d   : > { %v649_v20 = vand.u32 %v1110_v13, %v1407_v7  ;;  %v1103_v22 = vcombine.high %v237_v17, %v241_v18  ;;  %v1100_v27 = vcombine.low %v236_v15, %v240_v16  ;;  %v1102_v28 = vcombine.low %v237_v17, %v241_v18  ;;  %v207_v49 = vld [vmem:[%s1371_s29 + $0x118] sm:$0xff]  ;;  %v202_v56 = vld [vmem:[%s1371_s29 + $0xf0] sm:$0xff] }
  0x2e   : > { %675 = vmatpush1.bf16.msra.mxu0 %v1060_v44  ;;  %716 = vmatpush1.bf16.msra.mxu1 %v1062_v45  ;;  %v1089_v38 = vcombine.high %v222_v31, %v226_v32  ;;  %v1091_v39 = vcombine.high %v223_v34, %v227_v35  ;;  %v1090_v44 = vcombine.low %v223_v34, %v227_v35  ;;  %v211_v50 = vld [vmem:[%s1371_s29 + $0x138] sm:$0xff]  ;;  %v194_v63 = vld [vmem:[%s1371_s29 + $0xb0] sm:$0xff] }
  0x2f   : > { %676 = vmatprep.subr.bf16.mxu0 %v1053_v46  ;;  %717 = vmatprep.subr.bf16.mxu1 %v1055_v47  ;;  %v1081_v45 = vcombine.high %v214_v40, %v218_v41  ;;  %v1083_v46 = vcombine.high %v215_v0, %v219_v42  ;;  %v206_v47 = vld [vmem:[%s1371_s29 + $0x110] sm:$0xff]  ;;  %v1080_v51 = vcombine.low %v214_v40, %v218_v41  ;;  %v199_v57 = vld [vmem:[%s1371_s29 + $0xd8] sm:$0xff] }
  0x30   : > { %v203_v58 = vld [vmem:[%s1371_s29 + $0xf8] sm:$0xff]  ;;  %v1072_v59 = vcombine.low %v206_v47, %v210_v48  ;;  %v186_v10 = vld [vmem:[%s1371_s29 + $0x70] sm:$0xff]  ;;  %v1056_v13 = vcombine.low %v190_v62, %v194_v63 }
  0x31   : > { %v1067_v61 = vcombine.high %v199_v57, %v203_v58  ;;  %v1066_v5 = vcombine.low %v199_v57, %v203_v58  ;;  %v174_v17 = vld [vmem:[%s1371_s29 + $0x10] sm:$0xff] }
  0x32   : > { %677 = vmatpush1.bf16.msra.mxu0 %v1052_v52  ;;  %718 = vmatpush1.bf16.msra.mxu1 %v1054_v53  ;;  %v1082_v52 = vcombine.low %v215_v0, %v219_v42  ;;  %v1073_v53 = vcombine.high %v206_v47, %v210_v48  ;;  %v178_v18 = vld [vmem:[%s1371_s29 + $0x30] sm:$0xff] }
  0x33   : > { %678 = vmatprep.subr.bf16.mxu0 %v1045_v54  ;;  %719 = vmatprep.subr.bf16.mxu1 %v1047_v55  ;;  %v1075_v54 = vcombine.high %v207_v49, %v211_v50  ;;  %v198_v55 = vld [vmem:[%s1371_s29 + $0xd0] sm:$0xff]  ;;  %v1041_v25 = vcombine.high %v174_v17, %v178_v18 }
  0x34   : > { %v1065_v60 = vcombine.high %v198_v55, %v202_v56 }
  0x36   : > { %679 = vmatpush1.bf16.msra.mxu0 %v1044_v2  ;;  %720 = vmatpush1.bf16.msra.mxu1 %v1046_v3  ;;  %v191_v2 = vld [vmem:[%s1371_s29 + $0x98] sm:$0xff] }
  0x37   : > { %680 = vmatprep.subr.bf16.mxu0 %v1037_v4  ;;  %721 = vmatprep.subr.bf16.mxu1 %v1039_v6  ;;  %v195_v3 = vld [vmem:[%s1371_s29 + $0xb8] sm:$0xff]  ;;  %v1064_v4 = vcombine.low %v198_v55, %v202_v56  ;;  %v1057_v6 = vcombine.high %v190_v62, %v194_v63 }
  0x38   : > { %v1059_v8 = vcombine.high %v191_v2, %v195_v3 }
  0x3a   : > { %681 = vmatpush1.bf16.msra.mxu0 %v1036_v9  ;;  %722 = vmatpush1.bf16.msra.mxu1 %v1038_v11  ;;  %v182_v9 = vld [vmem:[%s1371_s29 + $0x50] sm:$0xff]  ;;  %v183_v11 = vld [vmem:[%s1371_s29 + $0x58] sm:$0xff] }
  0x3b   : > { %694 = vmatprep.subr.bf16.mxu0 %v646_v12  ;;  %735 = vmatprep.subr.bf16.mxu1 %v652_v14  ;;  %v187_v12 = vld [vmem:[%s1371_s29 + $0x78] sm:$0xff]  ;;  %v1058_v14 = vcombine.low %v191_v2, %v195_v3  ;;  %v1049_v15 = vcombine.high %v182_v9, %v186_v10  ;;  %v1048_v23 = vcombine.low %v182_v9, %v186_v10 }
  0x3c   : > { %v1051_v16 = vcombine.high %v183_v11, %v187_v12  ;;  %v1050_v24 = vcombine.low %v183_v11, %v187_v12 }
  0x3e   : > { %695 = vmatpush2.bf16.msra.mxu0 %v643_v19  ;;  %736 = vmatpush2.bf16.msra.mxu1 %v649_v20  ;;  %v246_v19 = vld [vmem:[%s1371_s29 + $0x250] sm:$0x33]  ;;  %v175_v20 = vld [vmem:[%s1371_s29 + $0x18] sm:$0xff] }
  0x3f   : > { %696 = vmatprep.subr.bf16.mxu0 %v1101_v21  ;;  %737 = vmatprep.subr.bf16.mxu1 %v1103_v22  ;;  %v179_v21 = vld [vmem:[%s1371_s29 + $0x38] sm:$0xff]  ;;  %v1113_v26 = vcombine.high %v246_v19, %v246_v19 }
  0x40   : > { %v247_v22 = vld [vmem:[%s1371_s29 + $0x258] sm:$0x33]  ;;  %v1042_v31 = vcombine.low %v175_v20, %v179_v21 }
  0x41   : > { %v658_v32 = vand.u32 %v1113_v26, %v1407_v7  ;;  %v1114_v34 = vcombine.low %v247_v22, %v247_v22 }
  0x42   : > { %697 = vmatpush2.bf16.msra.mxu0 %v1100_v27  ;;  %738 = vmatpush2.bf16.msra.mxu1 %v1102_v28  ;;  %v1043_v27 = vcombine.high %v175_v20, %v179_v21  ;;  %v1115_v28 = vcombine.high %v247_v22, %v247_v22 }
  0x43   : > { %748 = vmatprep.subr.bf16.mxu0 %v1097_v29  ;;  %789 = vmatprep.subr.bf16.mxu1 %v1099_v30  ;;  %v1040_v29 = vcombine.low %v174_v17, %v178_v18  ;;  %v1112_v30 = vcombine.low %v246_v19, %v246_v19  ;;  %v661_v41 = vand.u32 %v1114_v34, %v1407_v7 }
  0x44   : > { %v664_v35 = vand.u32 %v1115_v28, %v1407_v7 }
  0x45   : > { %699 = vmatmul.mubr.bf16.vlgmr.msra.gmra.mxu0 %v1425_v33  ;;  %740 = vmatmul.mubr.bf16.vlgmr.msra.gmra.mxu1 %v1425_v33  ;;  %v655_v40 = vand.u32 %v1112_v30, %v1407_v7 }
  0x46   : > { %749 = vmatpush1.bf16.msra.mxu0 %v1096_v36  ;;  %790 = vmatpush1.bf16.msra.mxu1 %v1098_v37  ;;  %v238_v36 = vld [vmem:[%s1371_s29 + $0x210] sm:$0xff] }
  0x47   : > { %750 = vmatprep.subr.bf16.mxu0 %v1089_v38  ;;  %791 = vmatprep.subr.bf16.mxu1 %v1091_v39  ;;  %v242_v37 = vld [vmem:[%s1371_s29 + $0x230] sm:$0xff]  ;;  %v239_v38 = vld [vmem:[%s1371_s29 + $0x218] sm:$0xff] }
  0x48   : > { %1118 = vmatprep.mubr.msk.bf16.mxu0 %vm634_vm0, %v1361_v1  ;;  %1119 = vmatprep.mubr.msk.bf16.mxu1 %vm634_vm0, %v1361_v1  ;;  %v1074_v1 = vcombine.low %v207_v49, %v211_v50  ;;  %v243_v39 = vld [vmem:[%s1371_s29 + $0x238] sm:$0xff]  ;;  %v1105_v0 = vcombine.high %v238_v36, %v242_v37 }
  0x49   : > { %v1107_v42 = vcombine.high %v239_v38, %v243_v39 }
  0x4a   : > { %751 = vmatpush1.bf16.msra.mxu0 %v1088_v43  ;;  %792 = vmatpush1.bf16.msra.mxu1 %v1090_v44  ;;  %v1104_v43 = vcombine.low %v238_v36, %v242_v37  ;;  %v1106_v44 = vcombine.low %v239_v38, %v243_v39 }
  0x4b   : > { %752 = vmatprep.subr.bf16.mxu0 %v1081_v45  ;;  %793 = vmatprep.subr.bf16.mxu1 %v1083_v46 }
  0x4e   : > { %753 = vmatpush1.bf16.msra.mxu0 %v1080_v51  ;;  %794 = vmatpush1.bf16.msra.mxu1 %v1082_v52 }
  0x4f   : > { %754 = vmatprep.subr.bf16.mxu0 %v1073_v53  ;;  %795 = vmatprep.subr.bf16.mxu1 %v1075_v54 }
  0x52   : > { %755 = vmatpush1.bf16.msra.mxu0 %v1072_v59  ;;  %796 = vmatpush1.bf16.msra.mxu1 %v1074_v1 }
  0x53   : > { %756 = vmatprep.subr.bf16.mxu0 %v1065_v60  ;;  %797 = vmatprep.subr.bf16.mxu1 %v1067_v61 }
  0x56   : > { %757 = vmatpush1.bf16.msra.mxu0 %v1064_v4  ;;  %798 = vmatpush1.bf16.msra.mxu1 %v1066_v5 }
  0x57   : > { %758 = vmatprep.subr.bf16.mxu0 %v1057_v6  ;;  %799 = vmatprep.subr.bf16.mxu1 %v1059_v8 }
  0x5a   : > { %759 = vmatpush1.bf16.msra.mxu0 %v1056_v13  ;;  %800 = vmatpush1.bf16.msra.mxu1 %v1058_v14 }
  0x5b   : > { %760 = vmatprep.subr.bf16.mxu0 %v1049_v15  ;;  %801 = vmatprep.subr.bf16.mxu1 %v1051_v16 }
  0x5e   : > { %761 = vmatpush1.bf16.msra.mxu0 %v1048_v23  ;;  %802 = vmatpush1.bf16.msra.mxu1 %v1050_v24 }
  0x5f   : > { %762 = vmatprep.subr.bf16.mxu0 %v1041_v25  ;;  %803 = vmatprep.subr.bf16.mxu1 %v1043_v27 }
  0x62   : > { %763 = vmatpush1.bf16.msra.mxu0 %v1040_v29  ;;  %804 = vmatpush1.bf16.msra.mxu1 %v1042_v31 }
  0x63   : > { %776 = vmatprep.subr.bf16.mxu0 %v658_v32  ;;  %817 = vmatprep.subr.bf16.mxu1 %v664_v35 }
  0x66   : > { %777 = vmatpush2.bf16.msra.mxu0 %v655_v40  ;;  %818 = vmatpush2.bf16.msra.mxu1 %v661_v41 }
  0x67   : > { %778 = vmatprep.subr.bf16.mxu0 %v1105_v0  ;;  %819 = vmatprep.subr.bf16.mxu1 %v1107_v42 }
  0x6a   : > { %779 = vmatpush2.bf16.msra.mxu0 %v1104_v43  ;;  %820 = vmatpush2.bf16.msra.mxu1 %v1106_v44 }
  0x6d   : > { %781 = vmatmul.mubr.bf16.vlgmr.msra.gmra.mxu0 %v1425_v33  ;;  %822 = vmatmul.mubr.bf16.vlgmr.msra.gmra.mxu1 %v1425_v33 }
 0x105   : > { %v700_v45 = vpop.f32.mrf.mxu0  ;;  %v741_v46 = vpop.f32.mrf.mxu1 }
 0x106   : > { %v840_v52 = vmul.f32 %v700_v45, %v700_v45  ;;  %v842_v55 = vmul.f32 %v741_v46, %v741_v46 }
 0x107   : > { %v702_v47 = vpop.f32.mrf.mxu0  ;;  %v743_v48 = vpop.f32.mrf.mxu1 }
 0x108   : > { %v841_v53 = vmul.f32 %v702_v47, %v702_v47  ;;  %v830_v54 = vadd.f32 %v702_v47, %v700_v45  ;;  %v843_v58 = vmul.f32 %v743_v48, %v743_v48 }
 0x109   : > { %v704_v7 = vpop.f32.mrf.mxu0  ;;  %v745_v49 = vpop.f32.mrf.mxu1 }
 0x10a   : > { %v848_v56 = vadd.f32 %v841_v53, %v840_v52  ;;  %v831_v57 = vadd.f32 %v830_v54, %v741_v46 }
 0x10b   : > { %v705_v50 = vpop.f32.mrf.mxu0  ;;  %v746_v51 = vpop.f32.mrf.mxu1 }
 0x10c   : > { %v849_v59 = vadd.f32 %v848_v56, %v842_v55  ;;  %v832_v1 = vadd.f32 %v831_v57, %v743_v48 }
 0x10e   : > { %v850_v61 = vadd.f32 %v849_v59, %v843_v58 }
 0x12d   : > { %v782_v60 = vpop.f32.mrf.mxu0  ;;  %v823_v63 = vpop.f32.mrf.mxu1 }
 0x12e   : > { %v833_v33 = vadd.f32 %v832_v1, %v782_v60  ;;  %v844_v62 = vmul.f32 %v782_v60, %v782_v60  ;;  %v846_v4 = vmul.f32 %v823_v63, %v823_v63 }
 0x12f   : > { %v784_v2 = vpop.f32.mrf.mxu0  ;;  %v825_v8 = vpop.f32.mrf.mxu1 }
 0x130   : > { %v851_v3 = vadd.f32 %v850_v61, %v844_v62  ;;  %v834_v5 = vadd.f32 %v833_v33, %v784_v2  ;;  %v845_v6 = vmul.f32 %v784_v2, %v784_v2  ;;  %v847_v17 = vmul.f32 %v825_v8, %v825_v8 }
 0x131   : > { %v786_v9 = vpop.f32.mrf.mxu0  ;;  %v827_v10 = vpop.f32.mrf.mxu1 }
 0x132   : > { %v835_v11 = vadd.f32 %v834_v5, %v823_v63  ;;  %v852_v12 = vadd.f32 %v851_v3, %v845_v6 }
 0x133   : > { %v787_v13 = vpop.f32.mrf.mxu0  ;;  %v828_v14 = vpop.f32.mrf.mxu1 }
 0x134   : > { %v836_v15 = vadd.f32 %v835_v11, %v825_v8  ;;  %v853_v16 = vadd.f32 %v852_v12, %v846_v4 }
 0x136   : > { %837 = vadd.xlane.f32.xlu0 %v836_v15  ;;  %v854_v18 = vadd.f32 %v853_v16, %v847_v17 }
 0x13a   : > { %855 = vadd.xlane.f32.xlu0 %v854_v18 }
 0x1bf   : > { %v838_v19 = vpop.xlane.xlu0 %837 }
 0x1c0   : > { %v839_v20 = vmul.f32 0.0009765625, %v838_v19 }
 0x1c2   : > { %v858_v22 = vmul.f32 %v839_v20, %v839_v20  ;;  %v861_v27 = vsub.f32 %v700_v45, %v839_v20  ;;  %v862_v28 = vsub.f32 %v702_v47, %v839_v20  ;;  %v863_v29 = vsub.f32 %v741_v46, %v839_v20 }
 0x1c3   : > { %v856_v21 = vpop.xlane.xlu0 %855  ;;  %v864_v30 = vsub.f32 %v743_v48, %v839_v20  ;;  %v865_v32 = vsub.f32 %v782_v60, %v839_v20  ;;  %v866_v34 = vsub.f32 %v784_v2, %v839_v20  ;;  %v867_v35 = vsub.f32 %v823_v63, %v839_v20 }
 0x1c4   : > { %v857_v23 = vmul.f32 0.0009765625, %v856_v21  ;;  %v868_v36 = vsub.f32 %v825_v8, %v839_v20 }
 0x1c6   : > { %v859_v24 = vsub.f32 %v857_v23, %v858_v22 }
 0x1c8   : > { %v860_v25 = vmax.f32 %v859_v24, 0.0 }
 0x1ca   : > { %v869_v26 = vadd.f32 1e-05, %v860_v25 }
 0x1cc   : > { %1201 = vrsqrt.f32 %v869_v26 }
 0x1d9   : > { %v1202_v31 = vpop.eup %1201 }
 0x1da   : > { %v871_v37 = vmul.f32 %v1202_v31, %v861_v27  ;;  %v872_v38 = vmul.f32 %v1202_v31, %v862_v28  ;;  %v873_v39 = vmul.f32 %v1202_v31, %v863_v29  ;;  %v874_v40 = vmul.f32 %v1202_v31, %v864_v30 }
 0x1db   : > { %v875_v41 = vmul.f32 %v1202_v31, %v865_v32  ;;  %v876_v0 = vmul.f32 %v1202_v31, %v866_v34  ;;  %v877_v42 = vmul.f32 %v1202_v31, %v867_v35  ;;  %v878_v43 = vmul.f32 %v1202_v31, %v868_v36 }
 0x1dc   : > { %vm879_vm3 = vcmp.gt.f32.partialorder %v871_v37, 0.0  ;;  %vm880_vm4 = vcmp.gt.f32.partialorder %v872_v38, 0.0  ;;  %vm881_vm5 = vcmp.gt.f32.partialorder %v873_v39, 0.0  ;;  %vm882_vm6 = vcmp.gt.f32.partialorder %v874_v40, 0.0 }
 0x1dd   : > { %vm883_vm7 = vcmp.gt.f32.partialorder %v875_v41, 0.0  ;;  %vm884_vm8 = vcmp.gt.f32.partialorder %v876_v0, 0.0  ;;  %vm885_vm9 = vcmp.gt.f32.partialorder %v877_v42, 0.0  ;;  %vm886_vm10 = vcmp.gt.f32.partialorder %v878_v43, 0.0 }
 0x1de   : > { %v887_v44 = vmul.f32 0.2, %v871_v37  ;;  %v888_v45 = vmul.f32 0.2, %v872_v38  ;;  %v889_v46 = vmul.f32 0.2, %v873_v39 }
 0x1df   : > { %v890_v47 = vmul.f32 0.2, %v874_v40  ;;  %v891_v48 = vmul.f32 0.2, %v875_v41  ;;  %v892_v7 = vmul.f32 0.2, %v876_v0 }
 0x1e0   : > { %v893_v49 = vmul.f32 0.2, %v877_v42  ;;  %v894_v50 = vmul.f32 0.2, %v878_v43  ;;  %v895_v51 = vsel %vm879_vm3, %v871_v37, %v887_v44  ;;  %v896_v52 = vsel %vm880_vm4, %v872_v38, %v888_v45 }
 0x1e1   : > { %v897_v53 = vsel %vm881_vm5, %v873_v39, %v889_v46  ;;  %v898_v54 = vsel %vm882_vm6, %v874_v40, %v890_v47  ;;  %v899_v55 = vsel %vm883_vm7, %v875_v41, %v891_v48  ;;  %v900_v56 = vsel %vm884_vm8, %v876_v0, %v892_v7 }
 0x1e2   : > { %v901_v57 = vsel %vm885_vm9, %v877_v42, %v893_v49  ;;  %v902_v58 = vsel %vm886_vm10, %v878_v43, %v894_v50  ;;  %v1129_v59 = vpack.c.bf16 %v896_v52, %v895_v51  ;;  %v1130_v1 = vpack.c.bf16 %v898_v54, %v897_v53 }
 0x1e3   : > { %v1131_v60 = vpack.c.bf16 %v900_v56, %v899_v55  ;;  %v1132_v61 = vpack.c.bf16 %v902_v58, %v901_v57 }
 0x1e4   : > { %935 = vst [vmem:[%s159_s5] sm:$0xff] %v1129_v59  ;;  %936 = vst [vmem:[%s159_s5 + $0x8] sm:$0xff] %v1130_v1 }
 0x1e5   : > { %937 = vst [vmem:[%s159_s5 + $0x10] sm:$0xff] %v1131_v60  ;;  %938 = vst [vmem:[%s159_s5 + $0x18] sm:$0xff] %v1132_v61 }
 0x1e6   : > { %1216 = shalt.err (!%p1213_p5)
}
 0x1e7   : > { %s1217_s24 = scalar_lea.hbm %s1486_s12, 512  ;;  %s1221_s27 = scalar_lea.hbm %s1536_s2, 1024 }
 0x1e8   : > { %p1218_p6 = scmp.ne.s32.totalorder %s1486_s12, %s1217_s24  ;;  %p1222_p10 = scmp.lt.s32.totalorder %s1486_s12, %s1536_s2 }
 0x1e9   : > { %p1223_p11 = scmp.lt.s32.totalorder %s1221_s27, %s1217_s24 }
 0x1ea   : > { %p1219_p7 = pnand %p1218_p6, %p1338_p4 }
 0x1eb   : > { %p1224_p12 = por %p1223_p11, %p1222_p10 }
 0x1ec   : > { %p1220_p9 = pneg %p1219_p7 }
 0x1ee   : > { %p1225_p13 = pnand %p1224_p12, %p1220_p9 }
 0x1f0   : > { %1228 = shalt.err (!%p1225_p13)
}
 0x1f1   : > { %1135 = dma.vmem_to_hbm [thread:$0]  (%p1338_p4), %s1488_s6, 512, %s1486_s12, %s940_s15  }
 0x1f2 PF: > { %p1141_p0 = scmp.ge.s32.totalorder %s1279_s14, 2  ;;  %s966_s30 = sand.u32 1, %s1259_s9  }
 0x1f3   : > { %s967_s3 = scalar_lea.sflag [#allocation5], %s966_s30 }
 0x1f4   : > { %p1138_p1 = pnand %p1141_p0, %p1345_p8 }
 0x1f6   : > { %p1139_p2 = pneg %p1138_p1 }
 0x1f8   : > { %1254 = dma.done.wait (%p1139_p2), %s967_s3, 512  }
 0x1f9   : > { %1256 = vsyncadd (%p1139_p2), %s967_s3, 4294966784  ;;  %s15_s14 = sadd.s32 1, %s1279_s14   ;;  %s1539_s9 = smov %s1263_s10 }
 0x1fa   : > { %p12_p3 = scmp.ge.s32.totalorder %s15_s14, 4   ;;  %s1540_s10 = smov %s1267_s11 }
 0x1fb   : > { %s1541_s11 = smov %s1351_s22  ;;  %s1542_s12 = smov %s1275_s13 }
 0x1fc   : > { %s1543_s13 = smov %s1545_s17  ;;  %14 = sbr.rel (!%p12_p3) target bundleno = 4 (0x4), region = 63 }
 0x201   :  { %972 = vsyncpa [#allocation5], 1 }
 0x202   :  { %974 = vsyncpa [#allocation5 + $0x1], 1 }

</bundles_post_ra>
